<compile_context>
chip_gen: v7x
topology: tpu7x:2x2x1
jax: 0.10.0
libtpu: 0.0.40
codegen_flags: <defaults>
</compile_context>

<pallas_src>
import jax
import jax.numpy as jnp
from jax.experimental import pallas as pl
from jax.experimental.pallas import tpu as pltpu


# ----------------------------------------------------------------------------
# Hardware / tiling helpers
# ----------------------------------------------------------------------------
_X_BLOCK_BUDGET = 4 << 20      # ~4 MiB per (Cin, tn) input block (pre double-buffer)
_VMEM_PHYS = None


def _vmem_phys_bytes():
    """Physical VMEM per core (generation-aware), with a conservative fallback."""
    global _VMEM_PHYS
    if _VMEM_PHYS is None:
        try:
            _VMEM_PHYS = int(pltpu.get_tpu_info().vmem_capacity_bytes)
        except Exception:
            _VMEM_PHYS = 64 << 20   # assume v7x (smallest) if query unavailable
    return _VMEM_PHYS


def _pick_tn(hw, cin, in_bytes, batch):
    """Largest lane tile dividing hw (preferring multiples of 256, else 128),
    under the per-block VMEM budget, a Cin-aware cap, while keeping >= ~4
    total grid steps so pipelining / megacore engage."""
    assert hw % 128 == 0
    cap = max(128, (_X_BLOCK_BUDGET // max(1, cin * in_bytes)) // 128 * 128)
    tn_max = 8192 if cin <= 256 else 2048          # Cin-aware cap (HBM-bound stages)
    limit = min(hw, tn_max, cap)
    min_hw_tiles = max(1, -(-4 // max(1, batch)))  # ceil(4 / batch)

    def largest_divisor(step, max_tn):
        best = None
        t = step
        while t <= max_tn:
            if hw % t == 0:
                best = t
            t += step
        return best

    constrained = min(limit, max(128, hw // min_hw_tiles))
    tn = largest_divisor(256, constrained) or largest_divisor(128, constrained)
    if tn is None:
        tn = largest_divisor(256, limit) or largest_divisor(128, limit) or 128
    return tn


# ----------------------------------------------------------------------------
# XLA fallback for tiny spatial extents / Cout=1 score heads
# ----------------------------------------------------------------------------
def _conv1x1_xla(x_nchw, w_oi, relu, compute_dtype):
    # Small-HW deep stages (HW < 128) and Cout=1 heads: the lane/sublane dims
    # collapse below tile size and per-call Pallas overhead dominates, so let
    # XLA compute and fuse these (e.g. with the bilinear resize).
    y = jnp.einsum(
        "oi,bihw->bohw",
        w_oi.astype(compute_dtype),
        x_nchw.astype(compute_dtype),
        preferred_element_type=jnp.float32,
    )
    if relu:
        y = jnp.maximum(y, 0.0)
    return y.astype(compute_dtype)


# ----------------------------------------------------------------------------
# Pallas kernel: fused 1x1 conv (channel matmul, bias=False) + optional ReLU
#   out[b, :, hw_tile] = relu( W (Cout,Cin) @ X[b] (Cin, hw_tile) )
# ----------------------------------------------------------------------------
def pallas_conv1x1(x_nchw, w_oi, relu=True, compute_dtype=jnp.bfloat16):
    """1x1 conv (bias=False) + optional ReLU as a Pallas W@X matmul kernel.

    x_nchw: (B, Cin, H, W)
    w_oi:   (Cout, Cin)   (PyTorch conv weight with the 1x1 kernel squeezed)
    returns (B, Cout, H, W) in `compute_dtype`
    """
    B, Cin, H, W = x_nchw.shape
    Cout, Cin_w = w_oi.shape
    assert Cin == Cin_w
    HW = H * W

    # Route degenerate shapes to XLA (see _conv1x1_xla).
    if HW < 128 or Cout < 8:
        return _conv1x1_xla(x_nchw, w_oi, relu, compute_dtype)

    # free reshape, no transpose; lane axis = H*W
    x = x_nchw.reshape(B, Cin, HW).astype(compute_dtype)
    w = w_oi.astype(compute_dtype)
    out_dtype = compute_dtype

    in_bytes = jnp.dtype(compute_dtype).itemsize
    out_bytes = jnp.dtype(out_dtype).itemsize

    # Ragged-HW guard: pad the lane axis once to a multiple of 128 and slice
    # the output, instead of one giant non-aligned block (VMEM-OOM risk on v7x).
    HWp = ((HW + 127) // 128) * 128
    if HWp != HW:
        x = jnp.pad(x, ((0, 0), (0, 0), (0, HWp - HW)))

    tn = _pick_tn(HWp, Cin, in_bytes, B)
    assert HWp % tn == 0

    def kernel(x_ref, w_ref, o_ref):
        acc = jnp.dot(w_ref[...], x_ref[...], preferred_element_type=jnp.float32)
        if relu:
            acc = jnp.maximum(acc, 0.0)
        o_ref[...] = acc.astype(o_ref.dtype)

    # Explicit, generation-aware VMEM budget: ~40 MiB cap on v7x (64 MiB phys),
    # up to ~96 MiB on v5e/v6e (128 MiB phys).
    x_blk = Cin * tn * in_bytes
    w_blk = Cout * Cin * in_bytes
    o_blk = Cout * tn * out_bytes
    gen_cap = (40 << 20) if _vmem_phys_bytes() <= (64 << 20) else (96 << 20)
    vmem_limit = int(min(max(2 * (x_blk + w_blk + o_blk) + (4 << 20), 16 << 20),
                         gen_cap))

    cost = pl.CostEstimate(
        flops=int(2 * B * HWp * Cin * Cout),
        transcendentals=0,
        bytes_accessed=int(B * Cin * HWp * in_bytes
                           + Cout * Cin * in_bytes
                           + B * Cout * HWp * out_bytes),
    )

    # TODO(synk): a grid-invariant weight block could use pipeline_mode=
    # pl.Buffered(1) to reclaim one buffer's VMEM; omitted for compile safety.
    out = pl.pallas_call(
        kernel,
        out_shape=jax.ShapeDtypeStruct((B, Cout, HWp), out_dtype),
        grid_spec=pltpu.PrefetchScalarGridSpec(
            num_scalar_prefetch=0,
            grid=(B, HWp // tn),
            in_specs=[
                # batch dim squeezed; kernel sees (Cin, tn)
                pl.BlockSpec((None, Cin, tn), lambda b, j: (b, 0, j)),
                # grid-invariant weight block (no re-fetch across grid steps)
                pl.BlockSpec((Cout, Cin), lambda b, j: (0, 0)),
            ],
            out_specs=pl.BlockSpec((None, Cout, tn), lambda b, j: (b, 0, j)),
        ),
        compiler_params=pltpu.CompilerParams(
            dimension_semantics=("parallel", "parallel"),
            vmem_limit_bytes=vmem_limit,
        ),
        cost_estimate=cost,
    )(x, w)

    if HWp != HW:
        out = out[:, :, :HW]
    return out.reshape(B, Cout, H, W)


# ----------------------------------------------------------------------------
# Plain-JAX glue helpers (synthetic stand-in paths only)
# ----------------------------------------------------------------------------
def _avgpool(x, f):
    # TODO(synk): assumes H, W divisible by every stride (synthetic-only path).
    B, C, H, W = x.shape
    return x.reshape(B, C, H // f, f, W // f, f).mean(axis=(3, 5))


def _resize_bilinear(x, size_hw):
    B, C, _, _ = x.shape
    x32 = x.astype(jnp.float32)
    return jax.image.resize(x32, (B, C, size_hw[0], size_hw[1]), method="bilinear")


# ----------------------------------------------------------------------------
# Config (from model.py)
# ----------------------------------------------------------------------------
CONVERT_CFG = [[64, 256, 512, 1024, 2048], [128, 256, 512, 512, 512]]
_BASE_STRIDES = (2, 4, 8, 16, 32)  # spatial downsample factors of the 5 ResNet stages


# ----------------------------------------------------------------------------
# Module pieces
# ----------------------------------------------------------------------------
def convert_layer(features, convert_weights):
    """ConvertLayer.forward: per-feature 1x1 conv (no bias) + ReLU (Pallas)."""
    return [pallas_conv1x1(f, w, relu=True) for f, w in zip(features, convert_weights)]


def synthetic_base(x, base_weights):
    # TODO(synk): `base` (ResNet backbone) is an injected module not defined in
    # model.py; deterministic stand-in = avg-pool downsample + 1x1 projection.
    feats = []
    for w, f in zip(base_weights, _BASE_STRIDES):
        feats.append(pallas_conv1x1(_avgpool(x, f), w, relu=True))
    return feats


def synthetic_merge1(features, x_size, m1_w):
    # TODO(synk): `merge1` is an injected module not defined in model.py;
    # stand-in = 1x1 projections + bilinear upsample to x_size.
    edge_feature = pallas_conv1x1(features[0], m1_w["edge_feat"], relu=True)     # -> 128 ch
    sal_feature = pallas_conv1x1(features[-1], m1_w["sal_feat"], relu=True)      # -> 128 ch
    # Cout=1 score heads fall through to the XLA einsum path inside
    # pallas_conv1x1 so they fuse with the bilinear resize.
    up_edge = [_resize_bilinear(
        pallas_conv1x1(edge_feature, m1_w["edge_score"], relu=False), x_size)]   # 1 ch
    up_sal = [_resize_bilinear(
        pallas_conv1x1(sal_feature, m1_w["sal_score"], relu=False), x_size)]     # 1 ch
    return up_edge, edge_feature, up_sal, sal_feature


def synthetic_merge2(edge_feature, sal_feature, x_size, m2_w):
    # TODO(synk): `merge2` is an injected module not defined in model.py;
    # stand-in = fused (edge, upsampled-sal) 1x1 score -> upsample.
    # The 256-channel concat is NOT materialized: the fuse weight is split into
    # its edge/sal halves and the two partial dots are summed.
    sal_up = jax.image.resize(
        sal_feature.astype(jnp.bfloat16),
        sal_feature.shape[:2] + edge_feature.shape[2:],
        method="bilinear",
    ).astype(edge_feature.dtype)
    w = m2_w["fuse_score"]                       # (1, 256) = [edge 128 | sal 128]
    w_e, w_s = w[:, :128], w[:, 128:]
    score = (jnp.einsum("oi,bihw->bohw", w_e, edge_feature,
                        preferred_element_type=jnp.float32)
             + jnp.einsum("oi,bihw->bohw", w_s, sal_up,
                          preferred_element_type=jnp.float32))
    return [_resize_bilinear(score, x_size)]


def tun_bone_forward(x, params, base_model_cfg="resnet"):
    """TUN_bone.forward"""
    x_size = x.shape[2:]
    # bf16 end-to-end internally (MXU path, halved DMA); f32 at the boundaries.
    x = x.astype(jnp.bfloat16)
    features = synthetic_base(x, params["base"])
    if base_model_cfg == "resnet":
        features = convert_layer(features, params["convert"])
    up_edge, edge_feature, up_sal, sal_feature = synthetic_merge1(
        features, x_size, params["merge1"])
    up_sal_final = synthetic_merge2(edge_feature, sal_feature, x_size, params["merge2"])
    return up_edge, up_sal, up_sal_final


# ----------------------------------------------------------------------------
# Deterministic parameter construction (weights pre-cast to bf16 once)
# ----------------------------------------------------------------------------
def make_params(key):
    idx = [0]

    def w(cout, cin, scale=0.05):
        k = jax.random.fold_in(key, idx[0])
        idx[0] += 1
        return (scale * jax.random.normal(k, (cout, cin), jnp.float32)).astype(jnp.bfloat16)

    params = {}
    # stand-in base: project 3 input channels to the ResNet stage channel counts
    params["base"] = [w(c, 3) for c in CONVERT_CFG[0]]
    # ConvertLayer: (Cout, Cin) per stage, 1x1 conv, bias=False
    params["convert"] = [w(co, ci) for ci, co in zip(CONVERT_CFG[0], CONVERT_CFG[1])]
    # stand-in merge1 / merge2 projections
    params["merge1"] = {
        "edge_feat": w(128, CONVERT_CFG[1][0]),   # 128 -> 128
        "sal_feat": w(128, CONVERT_CFG[1][-1]),   # 512 -> 128
        "edge_score": w(1, 128),
        "sal_score": w(1, 128),
    }
    params["merge2"] = {"fuse_score": w(1, 256)}
    return params


# ----------------------------------------------------------------------------
if __name__ == "__main__":
    key = jax.random.PRNGKey(0)
    params = make_params(jax.random.fold_in(key, 1))

    # small RGB-like input (NCHW); H, W divisible by 32 for the 5 backbone stages
    x = jax.random.normal(jax.random.fold_in(key, 2), (2, 3, 64, 64), jnp.float32)

    up_edge, up_sal, up_sal_final = tun_bone_forward(x, params, base_model_cfg="resnet")

    jax.block_until_ready((up_edge, up_sal, up_sal_final))

    assert up_edge[0].shape == (2, 1, 64, 64)
    assert up_sal[0].shape == (2, 1, 64, 64)
    assert up_sal_final[0].shape == (2, 1, 64, 64)
    print("KERNEL_OK")
</pallas_src>

<mosaic_0001>
module attributes {stable_mosaic.version = 11 : i64} {
  func.func @kernel(%arg0: i32, %arg1: i32, %arg2: memref<1x3x512xbf16, #tpu.memory_space<vmem>>, %arg3: memref<64x3xbf16, #tpu.memory_space<vmem>>, %arg4: memref<1x64x512xbf16, #tpu.memory_space<vmem>>) attributes {dimension_semantics = [#tpu.dimension_semantics<parallel>, #tpu.dimension_semantics<parallel>], iteration_bounds = array<i64: 2, 2>, scalar_prefetch = 0 : i64, scratch_operands = 0 : i64, tpu.core_type = #tpu.core_type<tc>, window_params = [{transform_indices = @transform_0, window_bounds = array<i64: 1, 3, 512>}, {pipeline_mode = #tpu.pipeline_mode<synchronous>, transform_indices = @transform_1, window_bounds = array<i64: 64, 3>}, {transform_indices = @transform_2, window_bounds = array<i64: 1, 64, 512>}]} {
    %c0 = arith.constant 0 : index
    %c0_0 = arith.constant 0 : index
    %0 = vector.load %arg3[%c0, %c0_0] : memref<64x3xbf16, #tpu.memory_space<vmem>>, vector<64x3xbf16>
    %c0_1 = arith.constant 0 : index
    %c0_2 = arith.constant 0 : index
    %c0_3 = arith.constant 0 : index
    %1 = vector.load %arg2[%c0_1, %c0_2, %c0_3] : memref<1x3x512xbf16, #tpu.memory_space<vmem>>, vector<1x3x512xbf16>
    %2 = vector.shape_cast %1 : vector<1x3x512xbf16> to vector<3x512xbf16>
    %cst = arith.constant dense<0.000000e+00> : vector<64x512xf32>
    %3 = tpu.matmul %0, %2, %cst {dimension_numbers = #tpu.dot_dimension_numbers<[1], [0], [0], [1], [0, 0, 1, 1], [], []>} : vector<64x3xbf16>, vector<3x512xbf16>, vector<64x512xf32> -> vector<64x512xf32>
    %cst_4 = arith.constant 0.000000e+00 : f32
    %4 = vector.broadcast %cst_4 : f32 to vector<64x512xf32>
    %5 = arith.maximumf %3, %4 : vector<64x512xf32>
    %6 = arith.truncf %5 : vector<64x512xf32> to vector<64x512xbf16>
    %c0_5 = arith.constant 0 : index
    %c0_6 = arith.constant 0 : index
    %c0_7 = arith.constant 0 : index
    %7 = vector.load %arg4[%c0_5, %c0_6, %c0_7] : memref<1x64x512xbf16, #tpu.memory_space<vmem>>, vector<1x64x512xbf16>
    %8 = vector.shape_cast %7 : vector<1x64x512xbf16> to vector<64x512xbf16>
    %9 = vector.shape_cast %6 : vector<64x512xbf16> to vector<1x64x512xbf16>
    tpu.vector_store %arg4[%c0_5, %c0_6, %c0_7], %9 {strides = array<i32>} : memref<1x64x512xbf16, #tpu.memory_space<vmem>>, vector<1x64x512xbf16>,
    return
  }
  func.func @transform_0(%arg0: i32, %arg1: i32) -> (i32, i32, i32) {
    %c0_i32 = arith.constant 0 : i32
    %c0_i32_0 = arith.constant 0 : i32
    return %arg0, %c0_i32, %arg1 : i32, i32, i32
  }
  func.func @transform_1(%arg0: i32, %arg1: i32) -> (i32, i32) {
    %c0_i32 = arith.constant 0 : i32
    %c0_i32_0 = arith.constant 0 : i32
    %c0_i32_1 = arith.constant 0 : i32
    return %c0_i32, %c0_i32_0 : i32, i32
  }
  func.func @transform_2(%arg0: i32, %arg1: i32) -> (i32, i32, i32) {
    %c0_i32 = arith.constant 0 : i32
    %c0_i32_0 = arith.constant 0 : i32
    return %arg0, %c0_i32, %arg1 : i32, i32, i32
  }
}

</mosaic_0001>

<bundles_post_ra>
// kernel: tpu_custom_call.1
= control target key start
LH: loop header
LB: loop body
LE: loop exit
PB: predicated region body
PF: predicated region fallthrough
CT: control target
= control target key end

     0   :  { %7 = vsyncpa [#allocation3], 0  ;;  %s1083_s0 = inlined_call_operand.vmem [shape: bf16[2,3,1024], index: 0, kind: input, shape index: {}]   ;;  %s1084_s1 = inlined_call_operand.vmem [shape: bf16[64,3], index: 1, kind: input, shape index: {}]   ;;  %s1085_s2 = inlined_call_operand.hbm [shape: bf16[2,64,1024], index: 2, kind: output, shape index: {}]  }
   0x1   :  { %9 = vsyncpa [#allocation3 + $0x1], 0  ;;  %s897_s9 = smov 0   ;;  %s899_s10 = smov 0  }
   0x2   :  { %s901_s11 = smov 0   ;;  %s903_s12 = smov 0  }
   0x3   :  { %s905_s13 = smov 0   ;;  %s907_s14 = smov 0  }
   0x4   :  { %s909_s15 = smov 0   ;;  %s911_s16 = smov 0  }
   0x5 LB: > { %s638_s17 = sadd.s32 4294967295, %s873_s16   ;;  %s639_s18 = sadd.s32 4294967294, %s873_s16   ;;  %s873_s16 = sphi %s911_s16, %s15_s16   ;;  %s869_s15 = sphi %s909_s15, %s1094_s15   ;;  %s865_s14 = sphi %s907_s14, %s1093_s14   ;;  %s861_s13 = sphi %s905_s13, %s1092_s13   ;;  %s857_s12 = sphi %s903_s12, %s1091_s12   ;;  %s853_s11 = sphi %s901_s11, %s1090_s11   ;;  %s849_s10 = sphi %s899_s10, %s1089_s10   ;;  %s845_s9 = sphi %s897_s9, %s1088_s9  }
   0x6   : > { %s24_s19 = sadd.s32 1, %s865_s14  ;;  %s27_s20 = sadd.s32 1, %s869_s15 }
   0x7   : > { %p25_p0 = scmp.ge.s32.totalorder %s24_s19, 2  ;;  %p95_p1 = scmp.ne.s32.totalorder %s853_s11, %s849_s10 }
   0x8   : > { %p96_p2 = scmp.eq.s32.totalorder %s638_s17, 3  ;;  %p101_p5 = scmp.ne.s32.totalorder %s849_s10, %s845_s9 }
   0x9   : > { %s1096_s19 = smov (%p25_p0, %s24_s19), 0  ;;  %s1098_s20 = smov (!%p25_p0, %s27_s20), %s869_s15 }
   0xa   : > { %s81_s21 = ssub.s32 %s865_s14, %s1096_s19  ;;  %p948_p3 = por %p96_p2, %p95_p1 }
   0xb   : > { %p29_p4 = scmp.ge.s32.totalorder %s1098_s20, 2  ;;  %p102_p6 = scmp.eq.s32.totalorder %s639_s18, 3 }
   0xc   : > { %p642_p7 = scmp.ge.s32.totalorder %s873_s16, 1  ;;  %p136_p9 = scmp.lt.s32.totalorder %s873_s16, 5 }
   0xd   : > { %s1100_s20 = smov (%p29_p4, %s1098_s20), 0  ;;  %p957_p8 = por %p102_p6, %p101_p5 }
   0xe   : > { %s80_s24 = ssub.s32 %s869_s15, %s1100_s20  ;;  %s85_s25 = sadd.s32 1, %s853_s11 }
   0xf   : > { %s82_s26 = sor.u32 %s81_s21, %s80_s24  ;;  %p137_p10 = pnand %p642_p7, %p136_p9 }
  0x10   : > { %p83_p11 = scmp.eq.s32.totalorder %s82_s26, 0  ;;  %s969_s28 = sshll.u32 (!%p137_p10), %s857_s12, 2  ;;  %v208_v0 = vlaneseq (!%p137_p10)  ;;  %v875_v1 = vmov (!%p137_p10), 1983009808   ;;  %v876_v4 = vmov (!%p137_p10), 0   ;;  %vm234_vm0 = vcmask (!%p137_p10), 1040384  }
  0x11   : > { %140 = sbr.rel (%p137_p10) target bundleno = 302 (0x12e), region = 28  ;;  %p163_p12 = scmp.lt.s32.totalorder (!%p137_p10), %s861_s13, 1  ;;  %v206_v2 = vunpack.c.l.s4 (!%p137_p10), %v875_v1  ;;  %282 = vmatprep.mubr.bf16.mxu0 (!%p137_p10), %v876_v4  ;;  %355 = vmatprep.mubr.bf16.mxu1 (!%p137_p10), %v876_v4  ;;  %vm235_vm1 = vcmask (!%p137_p10), 1041408   ;;  %v877_v7 = vmov (!%p137_p10), 65535   ;;  %v775_v20 = vld [vmem:[%s1084_s1] sm:$0xff] (!%p137_p10)   ;;  %vm221_vm2 = vcmask (!%p137_p10), 23552  }
  0x12   : > { %s966_s27 = scalar_select %p83_p11, %s853_s11, %s85_s25  }
  0x13   : > { %p165_p13 = scmp.lt.s32.totalorder (!%p137_p10), %s969_s28, 7  ;;  %v209_v3 = vshrl.u32 (!%p137_p10), %v208_v0, 7  ;;  %v207_v5 = vunpack.c.0.s8 (!%p137_p10), %v206_v2  ;;  %v236_v8 = vsel (!%p137_p10), %vm234_vm0, 4294967295, %v877_v7  ;;  %v776_v21 = vld [vmem:[%s1084_s1 + $0x8] sm:$0xff] (!%p137_p10)   ;;  %v777_v22 = vld [vmem:[%s1084_s1 + $0x10] sm:$0xff] (!%p137_p10)   ;;  %v778_v23 = vld [vmem:[%s1084_s1 + $0x18] sm:$0xff] (!%p137_p10)  }
  0x14   : > { %v237_v11 = vsel (!%p137_p10), %vm235_vm1, %v236_v8, 0  ;;  %s878_s21 = smov (!%p137_p10), [#allocation2]  }
  0x15   : > { %v210_v6 = vsub.s32 (!%p137_p10), %v207_v5, %v209_v3  ;;  %s783_s24 = sshll.u32 (!%p137_p10), %s878_s21, 4  ;;  %s784_s24 = int_to_ptr.vmem [resolvable:$false] %s783_s24 }
  0x16   : > { %s785_s25 = scalar_lea.vmem (!%p137_p10), %s784_s24, 4096 }
  0x18   : > { %s164_s29 = scalar_select %p163_p12, %s861_s13, 1 }
  0x19   : > { %s166_s30 = scalar_select %p165_p13, %s969_s28, 7 }
  0x1a   : > { %s645_s3 = sshll.u32 %s164_s29, 3 }
  0x1b   : > { %s168_s4 = sadd.s32 %s645_s3, %s166_s30  ;;  %s159_s30 = sand.u32 1, %s849_s10  }
  0x1c   : > { %s646_s5 = sshll.u32 %s168_s4, 1  ;;  %s643_s3 = sshll.u32 %s159_s30, 7 }
  0x1d   : > { %s170_s8 = scalar_lea.vmem %s1083_s0, %s646_s5  ;;  %s1001_s4 = scalar_lea.vmem [#allocation2], %s643_s3 }
  0x1e   : > { %v182_v9 = vld [vmem:[%s170_s8] sm:$0xff]  ;;  %s677_s5 = sshll.u32 %s861_s13, 6  ;;  %s1031_s17 = scalar_lea.sflag [#allocation3], %s159_s30 }
  0x1f   : > { %v211_v10 = vrot.slane %v182_v9, %v210_v6  ;;  %v204_v12 = vcombine.high %v182_v9, %v182_v9  ;;  %s553_s6 = sadd.s32 %s677_s5, %s969_s28  ;;  %s556_s28 = sshll.u32 %s1001_s4, 4  ;;  %s1024_s28 = int_to_ptr.vmem [resolvable:$true] %s556_s28 }
  0x20   : > { %s678_s13 = sshll.u32 %s553_s6, 6  ;;  %s779_s18 = scalar_lea.vmem %s1024_s28, 2048 }
  0x21   : > { %v219_v13 = vcombine.high %v211_v10, %v211_v10  ;;  %v218_v14 = vrot.slane %v204_v12, %v210_v6  ;;  %v239_v15 = vand.u32 %v237_v11, %v211_v10  ;;  %s1021_s12 = scalar_lea.hbm %s1085_s2, %s678_s13  ;;  %p780_p0 = scmp.ne.s32.totalorder %s1024_s28, %s779_s18 }
  0x22   : > { %p786_p4 = scmp.lt.s32.totalorder %s1024_s28, %s784_s24  ;;  %p787_p5 = scmp.lt.s32.totalorder %s785_s25, %s779_s18 }
  0x23   : > { %v242_v16 = vand.u32 %v237_v11, %v219_v13  ;;  %v220_v17 = vcombine.high %v218_v14, %v218_v14  ;;  %v245_v18 = vand.u32 %v237_v11, %v218_v14  ;;  %p781_p1 = pnand %p780_p0, %p948_p3 }
  0x24   : > { %p788_p6 = por %p787_p5, %p786_p4 }
  0x25   : > { %250 = vmatprep.subr.bf16.mxu0 %v242_v16  ;;  %v248_v19 = vand.u32 %v237_v11, %v220_v17  ;;  %p782_p2 = pneg %p781_p1 }
  0x26   : > { %251 = vmatpush1.bf16.msra.mxu0 %v239_v15 }
  0x27   : > { %323 = vmatprep.subr.bf16.mxu1 %v248_v19  ;;  %p789_p7 = pnand %p788_p6, %p782_p2 }
  0x28   : > { %324 = vmatpush1.bf16.msra.mxu1 %v245_v18 }
  0x29   : > { %651 = vmatmul.mubr.msk.bf16.vlgmr.msra.gmra.mrb[0].mxu0 %vm221_vm2, %v775_v20 }
  0x2a   : > { %292 = vmatprep.mubr.bf16.mxu0 %v876_v4 }
  0x2b   : > { %655 = vmatmul.mubr.msk.bf16.vlgmr.msra.gmra.mrb[0].mxu1 %vm221_vm2, %v775_v20 }
  0x2c   : > { %365 = vmatprep.mubr.bf16.mxu1 %v876_v4 }
  0x31   : > { %652 = vmatmul.mubr.msk.bf16.gmra.mrb[4].mxu0 %vm221_vm2, %v776_v21 }
  0x32   : > { %302 = vmatprep.mubr.bf16.mxu0 %v876_v4 }
  0x33   : > { %656 = vmatmul.mubr.msk.bf16.gmra.mrb[4].mxu1 %vm221_vm2, %v776_v21 }
  0x34   : > { %375 = vmatprep.mubr.bf16.mxu1 %v876_v4 }
  0x39   : > { %653 = vmatmul.mubr.msk.bf16.gmra.mrb[8].mxu0 %vm221_vm2, %v777_v22 }
  0x3a   : > { %312 = vmatprep.mubr.bf16.mxu0 %v876_v4 }
  0x3b   : > { %657 = vmatmul.mubr.msk.bf16.gmra.mrb[8].mxu1 %vm221_vm2, %v777_v22 }
  0x3c   : > { %385 = vmatprep.mubr.bf16.mxu1 %v876_v4 }
  0x41   : > { %654 = vmatmul.mubr.msk.bf16.gmra.mrb[12].mxu0 %vm221_vm2, %v778_v23 }
  0x43   : > { %658 = vmatmul.mubr.msk.bf16.gmra.mrb[12].mxu1 %vm221_vm2, %v778_v23 }
  0xfc   : > { %v284_v24 = vpop.f32.mrb[0].mxu0 }
  0xfd   : > { %v396_v25 = vmax.f32 %v284_v24, 0.0  ;;  %v286_v26 = vpop.f32.mrb[1].mxu0 }
  0xfe   : > { %v397_v27 = vmax.f32 %v286_v26, 0.0  ;;  %v288_v28 = vpop.f32.mrb[2].mxu0  ;;  %v357_v29 = vpop.f32.mrb[0].mxu1 }
  0xff   : > { %v400_v30 = vmax.f32 %v288_v28, 0.0  ;;  %v398_v31 = vmax.f32 %v357_v29, 0.0  ;;  %v290_v32 = vpop.f32.mrb[3].mxu0  ;;  %v359_v33 = vpop.f32.mrb[1].mxu1 }
 0x100   : > { %v681_v34 = vpack.c.bf16 %v397_v27, %v396_v25  ;;  %v401_v35 = vmax.f32 %v290_v32, 0.0  ;;  %v399_v36 = vmax.f32 %v359_v33, 0.0  ;;  %v361_v37 = vpop.f32.mrb[2].mxu1 }
 0x101   : > { %v402_v38 = vmax.f32 %v361_v37, 0.0  ;;  %v363_v39 = vpop.f32.mrb[3].mxu1 }
 0x102   : > { %524 = vst [vmem:[%s1001_s4] sm:$0xff] %v681_v34  ;;  %v683_v40 = vpack.c.bf16 %v401_v35, %v400_v30  ;;  %v682_v41 = vpack.c.bf16 %v399_v36, %v398_v31  ;;  %v403_v42 = vmax.f32 %v363_v39, 0.0 }
 0x104   : > { %526 = vst [vmem:[%s1001_s4 + $0x10] sm:$0xff] %v683_v40  ;;  %525 = vst [vmem:[%s1001_s4 + $0x8] sm:$0xff] %v682_v41  ;;  %v684_v43 = vpack.c.bf16 %v403_v42, %v402_v38  ;;  %v294_v44 = vpop.f32.mrb[4].mxu0 }
 0x105   : > { %v404_v45 = vmax.f32 %v294_v44, 0.0  ;;  %v296_v46 = vpop.f32.mrb[5].mxu0 }
 0x106   : > { %527 = vst [vmem:[%s1001_s4 + $0x18] sm:$0xff] %v684_v43  ;;  %v405_v47 = vmax.f32 %v296_v46, 0.0  ;;  %v298_v48 = vpop.f32.mrb[6].mxu0  ;;  %v367_v49 = vpop.f32.mrb[4].mxu1 }
 0x107   : > { %v408_v50 = vmax.f32 %v298_v48, 0.0  ;;  %v406_v51 = vmax.f32 %v367_v49, 0.0  ;;  %v300_v52 = vpop.f32.mrb[7].mxu0  ;;  %v369_v53 = vpop.f32.mrb[5].mxu1 }
 0x108   : > { %v685_v54 = vpack.c.bf16 %v405_v47, %v404_v45  ;;  %v409_v55 = vmax.f32 %v300_v52, 0.0  ;;  %v407_v56 = vmax.f32 %v369_v53, 0.0  ;;  %v371_v57 = vpop.f32.mrb[6].mxu1 }
 0x109   : > { %v410_v58 = vmax.f32 %v371_v57, 0.0  ;;  %v373_v59 = vpop.f32.mrb[7].mxu1 }
 0x10a   : > { %528 = vst [vmem:[%s1001_s4 + $0x20] sm:$0xff] %v685_v54  ;;  %v687_v60 = vpack.c.bf16 %v409_v55, %v408_v50  ;;  %v686_v61 = vpack.c.bf16 %v407_v56, %v406_v51  ;;  %v411_v62 = vmax.f32 %v373_v59, 0.0 }
 0x10c   : > { %530 = vst [vmem:[%s1001_s4 + $0x30] sm:$0xff] %v687_v60  ;;  %529 = vst [vmem:[%s1001_s4 + $0x28] sm:$0xff] %v686_v61  ;;  %v688_v63 = vpack.c.bf16 %v411_v62, %v410_v58  ;;  %v304_v0 = vpop.f32.mrb[8].mxu0 }
 0x10d   : > { %v412_v1 = vmax.f32 %v304_v0, 0.0  ;;  %v306_v2 = vpop.f32.mrb[9].mxu0 }
 0x10e   : > { %531 = vst [vmem:[%s1001_s4 + $0x38] sm:$0xff] %v688_v63  ;;  %v413_v3 = vmax.f32 %v306_v2, 0.0  ;;  %v308_v4 = vpop.f32.mrb[10].mxu0  ;;  %v377_v5 = vpop.f32.mrb[8].mxu1 }
 0x10f   : > { %v416_v6 = vmax.f32 %v308_v4, 0.0  ;;  %v414_v7 = vmax.f32 %v377_v5, 0.0  ;;  %v310_v8 = vpop.f32.mrb[11].mxu0  ;;  %v379_v9 = vpop.f32.mrb[9].mxu1 }
 0x110   : > { %v689_v10 = vpack.c.bf16 %v413_v3, %v412_v1  ;;  %v417_v11 = vmax.f32 %v310_v8, 0.0  ;;  %v415_v12 = vmax.f32 %v379_v9, 0.0  ;;  %v381_v13 = vpop.f32.mrb[10].mxu1 }
 0x111   : > { %v418_v14 = vmax.f32 %v381_v13, 0.0  ;;  %v383_v15 = vpop.f32.mrb[11].mxu1 }
 0x112   : > { %532 = vst [vmem:[%s1001_s4 + $0x40] sm:$0xff] %v689_v10  ;;  %v691_v16 = vpack.c.bf16 %v417_v11, %v416_v6  ;;  %v690_v17 = vpack.c.bf16 %v415_v12, %v414_v7  ;;  %v419_v18 = vmax.f32 %v383_v15, 0.0 }
 0x114   : > { %534 = vst [vmem:[%s1001_s4 + $0x50] sm:$0xff] %v691_v16  ;;  %533 = vst [vmem:[%s1001_s4 + $0x48] sm:$0xff] %v690_v17  ;;  %v692_v19 = vpack.c.bf16 %v419_v18, %v418_v14  ;;  %v314_v20 = vpop.f32.mrb[12].mxu0 }
 0x115   : > { %v420_v21 = vmax.f32 %v314_v20, 0.0  ;;  %v316_v22 = vpop.f32.mrb[13].mxu0 }
 0x116   : > { %535 = vst [vmem:[%s1001_s4 + $0x58] sm:$0xff] %v692_v19  ;;  %v421_v23 = vmax.f32 %v316_v22, 0.0  ;;  %v318_v24 = vpop.f32.mrb[14].mxu0  ;;  %v387_v25 = vpop.f32.mrb[12].mxu1 }
 0x117   : > { %v424_v26 = vmax.f32 %v318_v24, 0.0  ;;  %v422_v27 = vmax.f32 %v387_v25, 0.0  ;;  %v320_v28 = vpop.f32.mrb[15].mxu0  ;;  %v389_v29 = vpop.f32.mrb[13].mxu1 }
 0x118   : > { %v693_v30 = vpack.c.bf16 %v421_v23, %v420_v21  ;;  %v425_v31 = vmax.f32 %v320_v28, 0.0  ;;  %v423_v32 = vmax.f32 %v389_v29, 0.0  ;;  %v391_v33 = vpop.f32.mrb[14].mxu1 }
 0x119   : > { %v426_v34 = vmax.f32 %v391_v33, 0.0  ;;  %v393_v35 = vpop.f32.mrb[15].mxu1 }
 0x11a   : > { %536 = vst [vmem:[%s1001_s4 + $0x60] sm:$0xff] %v693_v30  ;;  %v695_v36 = vpack.c.bf16 %v425_v31, %v424_v26  ;;  %v694_v37 = vpack.c.bf16 %v423_v32, %v422_v27  ;;  %v427_v38 = vmax.f32 %v393_v35, 0.0 }
 0x11c   : > { %538 = vst [vmem:[%s1001_s4 + $0x70] sm:$0xff] %v695_v36  ;;  %537 = vst [vmem:[%s1001_s4 + $0x68] sm:$0xff] %v694_v37  ;;  %v696_v39 = vpack.c.bf16 %v427_v38, %v426_v34 }
 0x11e   : > { %539 = vst [vmem:[%s1001_s4 + $0x78] sm:$0xff] %v696_v39 }
 0x11f   : > { %792 = shalt.err (!%p789_p7)
}
 0x120   : > { %s793_s26 = scalar_lea.hbm %s1021_s12, 2048  ;;  %s797_s3 = scalar_lea.hbm %s1085_s2, 8192 }
 0x121   : > { %p794_p9 = scmp.ne.s32.totalorder %s1021_s12, %s793_s26  ;;  %p798_p12 = scmp.lt.u32.totalorder %s1021_s12, %s1085_s2 }
 0x122   : > { %p799_p13 = scmp.lt.u32.totalorder %s797_s3, %s793_s26  ;;  %p801_p1 = scmp.lt.u32.totalorder %s793_s26, %s1021_s12 }
 0x123   : > { %p795_p10 = pnand %p794_p9, %p948_p3 }
 0x124   : > { %p800_p0 = por %p799_p13, %p798_p12 }
 0x125   : > { %p796_p11 = pneg %p795_p10 }
 0x126   : > { %p802_p2 = por %p801_p1, %p800_p0 }
 0x128   : > { %p803_p4 = pnand %p802_p2, %p796_p11 }
 0x12a   : > { %806 = shalt.err (!%p803_p4)
}
 0x12b   : > { %s879_s6 = smov 256   ;;  %s880_s13 = smov 512  }
 0x12c   : > { %s881_s7 = smov 16  }
 0x12d   : > { %697 = dma.vmem_to_hbm [thread:$0]  (%p948_p3), %s1024_s28, 2048, %s1021_s12, %s1031_s17, %s879_s6, %s880_s13, %s881_s7  }
 0x12e PF: > { %p703_p5 = scmp.ge.s32.totalorder %s873_s16, 2  ;;  %s571_s8 = sand.u32 1, %s845_s9  }
 0x12f   : > { %s572_s18 = scalar_lea.sflag [#allocation3], %s571_s8 }
 0x130   : > { %p700_p6 = pnand %p703_p5, %p957_p8 }
 0x132   : > { %840 = dma.done.wait (!%p700_p6), %s572_s18, 2048  }
 0x133   : > { %842 = vsyncadd (!%p700_p6), %s572_s18, 4294965248  ;;  %s15_s16 = sadd.s32 1, %s873_s16   ;;  %s1088_s9 = smov %s849_s10 }
 0x134   : > { %p12_p7 = scmp.ge.s32.totalorder %s15_s16, 6   ;;  %s1089_s10 = smov %s853_s11 }
 0x135   : > { %s1090_s11 = smov %s966_s27  ;;  %s1091_s12 = smov %s865_s14 }
 0x136   : > { %s1092_s13 = smov %s869_s15  ;;  %s1093_s14 = smov %s1096_s19 }
 0x137   : > { %s1094_s15 = smov %s1100_s20  ;;  %14 = sbr.rel (!%p12_p7) target bundleno = 5 (0x5), region = 63 }
 0x13e   :  { %577 = vsyncpa [#allocation3], 1 }
 0x13f   :  { %579 = vsyncpa [#allocation3 + $0x1], 1 }

</bundles_post_ra>
